<compile_context>
chip_gen: v5e
topology: v5e:2x2
jax: 0.10.0
libtpu: 0.0.40
codegen_flags: <defaults>
</compile_context>

<pallas_src>
import jax
import jax.numpy as jnp
from jax.experimental import pallas as pl
from jax.experimental.pallas import tpu as pltpu

SIZE = 256            # n_in of the discriminator
NEG_SLOPE = 0.2       # LeakyReLU slope
LANE = 128
SUBLANE_BF16 = 16     # bf16 packs 16 rows per vreg
MAX_TB = 2048         # batch-tile cap (bf16 x tile = 1 MiB, well within scoped VMEM)

# Layer dims exactly as the nn.Sequential defines them.
LAYER_DIMS = [
    (SIZE,        SIZE // 2),
    (SIZE // 2,   SIZE // 4),
    (SIZE // 4,   SIZE // 8),
    (SIZE // 8,   SIZE // 16),
    (SIZE // 16,  SIZE // 32),
    (SIZE // 32,  SIZE // 64),
    (SIZE // 64,  SIZE // 128),
    (SIZE // 128, 1),
]
NUM_LAYERS = len(LAYER_DIMS)


def _pad_to(n, m):
    return ((n + m - 1) // m) * m


def _choose_tb(B):
    """Batch tile: multiple of 16, capped at MAX_TB, >=2 grid steps when possible."""
    Bp = _pad_to(B, SUBLANE_BF16)
    if Bp <= 2 * SUBLANE_BF16:
        return Bp                                   # too small to split
    if Bp <= 2 * MAX_TB:
        # Split into (at least) 2 tiles so v7x megacore can use both TensorCores.
        return min(MAX_TB, _pad_to(Bp // 2, SUBLANE_BF16))
    return MAX_TB


# ---------------------------------------------------------------------------
# Kernel: whole 8-layer MLP for one batch tile.
# ---------------------------------------------------------------------------
def disc_kernel(x_ref, w0_ref, wr_ref, b_ref, out_ref):
    # Layer 0: [TB, 256] bf16 @ [256, 128] bf16 -> f32 accumulate on the MXU.
    h = jnp.dot(x_ref[...], w0_ref[...], preferred_element_type=jnp.float32)
    h = h + b_ref[0:1, :]                              # (1,128) sublane broadcast, f32
    h = jnp.where(h > 0, h, NEG_SLOPE * h)             # LeakyReLU(0.2)
    # Dropout(0.3): identity in eval mode.

    # Layers 1..7: [TB, 128] @ [128, 128] (zero-padded beyond the real dims).
    for i in range(1, NUM_LAYERS):
        h = jnp.dot(h.astype(jnp.bfloat16), wr_ref[i - 1],
                    preferred_element_type=jnp.float32)
        h = h + b_ref[i:i + 1, :]
        if i < NUM_LAYERS - 1:
            h = jnp.where(h > 0, h, NEG_SLOPE * h)
        else:
            # Numerically stable sigmoid: z = exp(-|h|) in (0, 1], no overflow.
            #   h >= 0: sigmoid = 1 / (1 + z)
            #   h <  0: sigmoid = z / (1 + z)
            # reciprocal(approx=True) goes to the EUP slot (~2^-12 rel. error).
            z = jnp.exp(-jnp.abs(h))
            inv = pl.reciprocal(1.0 + z, approx=True)
            h = jnp.where(h >= 0, inv, z * inv)

    # Only column 0 is the real output -> narrow (TB, 1) writeback.
    out_ref[...] = h[:, 0:1]


# ---------------------------------------------------------------------------
# One-time parameter packing (call at init, NOT per forward).
# ---------------------------------------------------------------------------
def pack_params(weights, biases):
    """weights[i]: [in_i, out_i] f32, biases[i]: [out_i] f32  ->  (w0, wr, b)."""
    din0, dout0 = LAYER_DIMS[0]
    w0 = jnp.zeros((_pad_to(din0, LANE), LANE), jnp.float32)
    w0 = w0.at[:din0, :dout0].set(weights[0]).astype(jnp.bfloat16)

    wr = jnp.zeros((NUM_LAYERS - 1, LANE, LANE), jnp.float32)
    for i in range(1, NUM_LAYERS):
        din, dout = LAYER_DIMS[i]
        wr = wr.at[i - 1, :din, :dout].set(weights[i])
    wr = wr.astype(jnp.bfloat16)

    b = jnp.zeros((NUM_LAYERS, LANE), jnp.float32)
    for i, (_, dout) in enumerate(LAYER_DIMS):
        b = b.at[i, :dout].set(biases[i])
    return w0, wr, b


# ---------------------------------------------------------------------------
# Jitted forward: no parameter padding, no f32 x, minimal writeback.
# ---------------------------------------------------------------------------
@jax.jit
def discriminator_forward(x, w0_p, wr_p, b_p):
    """x: [B, SIZE] (or any shape reshapable to it), params from pack_params."""
    B = x.shape[0]
    x = x.reshape(B, SIZE).astype(jnp.bfloat16)     # cast once: halves input DMA

    TB = _choose_tb(B)                              # static under jit
    Bp = _pad_to(B, TB)
    if Bp != B:
        x = jnp.pad(x, ((0, Bp - B), (0, 0)))       # cheap pad, no zero-array scatter

    out_padded = pl.pallas_call(
        disc_kernel,
        out_shape=jax.ShapeDtypeStruct((Bp, 1), jnp.float32),
        grid_spec=pltpu.PrefetchScalarGridSpec(
            num_scalar_prefetch=0,
            grid=(Bp // TB,),
            in_specs=[
                pl.BlockSpec((TB, SIZE), lambda i: (i, 0)),                   # x tile (bf16)
                pl.BlockSpec((SIZE, LANE), lambda i: (0, 0)),                 # w0 (resident)
                pl.BlockSpec((NUM_LAYERS - 1, LANE, LANE),
                             lambda i: (0, 0, 0)),                            # w1..7 (resident)
                pl.BlockSpec((NUM_LAYERS, LANE), lambda i: (0, 0)),           # biases (resident)
            ],
            out_specs=pl.BlockSpec((TB, 1), lambda i: (i, 0)),                # narrow output
        ),
        compiler_params=pltpu.CompilerParams(
            dimension_semantics=("parallel",)),
    )(x, w0_p, wr_p, b_p)

    return out_padded[:B]                           # -> [B, 1]


# ---------------------------------------------------------------------------
# Parameters + references for the self-check.
# ---------------------------------------------------------------------------
def make_params(key):
    """Deterministic synthetic parameters (shapes match the torch module)."""
    ws, bs = [], []
    for i, (din, dout) in enumerate(LAYER_DIMS):
        kw, kb = jax.random.split(jax.random.fold_in(key, i))
        scale = 1.0 / jnp.sqrt(jnp.float32(din))
        ws.append(jax.random.uniform(kw, (din, dout), jnp.float32, -scale, scale))
        bs.append(jax.random.uniform(kb, (dout,), jnp.float32, -scale, scale))
    return ws, bs


def reference_forward_f32(x, weights, biases):
    """Plain-JAX f32 reference (eval-mode semantics of the torch module)."""
    h = x.reshape(x.shape[0], SIZE)
    for i, (w, b) in enumerate(zip(weights, biases)):
        h = h @ w + b
        if i < NUM_LAYERS - 1:
            h = jnp.where(h > 0, h, NEG_SLOPE * h)
        else:
            h = jax.nn.sigmoid(h)
    return h


def reference_forward_bf16(x, weights, biases):
    """Reference matching the kernel's mixed precision (bf16 dots, f32 elsewhere)."""
    h = x.reshape(x.shape[0], SIZE).astype(jnp.float32)
    for i, (w, b) in enumerate(zip(weights, biases)):
        h = jnp.dot(h.astype(jnp.bfloat16), w.astype(jnp.bfloat16),
                    preferred_element_type=jnp.float32) + b
        if i < NUM_LAYERS - 1:
            h = jnp.where(h > 0, h, NEG_SLOPE * h)
        else:
            h = jax.nn.sigmoid(h)
    return h


if __name__ == "__main__":
    key = jax.random.PRNGKey(0)
    kx, kp = jax.random.split(key)

    weights, biases = make_params(kp)
    # One-time packing (outside the jitted forward).
    w0_p, wr_p, b_p = pack_params(weights, biases)

    ok = True
    # B=8 exercises the single-tile path; B=40 exercises padding + a 2-step grid.
    for B in (8, 40):
        xb = jax.random.normal(jax.random.fold_in(kx, B), (B, SIZE), jnp.float32)
        out = discriminator_forward(xb, w0_p, wr_p, b_p)
        out = jax.block_until_ready(out)
        assert out.shape == (B, 1), out.shape

        ref16 = reference_forward_bf16(xb, weights, biases)[:, :1]
        ref32 = reference_forward_f32(xb, weights, biases)[:, :1]
        ok &= bool(jnp.allclose(out, ref16, atol=5e-3, rtol=5e-3))
        ok &= bool(jnp.allclose(out, ref32, atol=5e-2))

    assert ok, "mismatch vs reference"
    print("KERNEL_OK")
</pallas_src>

<mosaic_0001>
module attributes {stable_mosaic.version = 11 : i64} {
  func.func @disc_kernel(%arg0: i32, %arg1: memref<16x256xbf16, #tpu.memory_space<vmem>>, %arg2: memref<256x128xbf16, #tpu.memory_space<vmem>>, %arg3: memref<7x128x128xbf16, #tpu.memory_space<vmem>>, %arg4: memref<8x128xf32, #tpu.memory_space<vmem>>, %arg5: memref<16x1xf32, #tpu.memory_space<vmem>>) attributes {dimension_semantics = [#tpu.dimension_semantics<parallel>], iteration_bounds = array<i64: 1>, scalar_prefetch = 0 : i64, scratch_operands = 0 : i64, tpu.core_type = #tpu.core_type<tc>, window_params = [{transform_indices = @transform_0, window_bounds = array<i64: 16, 256>}, {pipeline_mode = #tpu.pipeline_mode<synchronous>, transform_indices = @transform_1, window_bounds = array<i64: 256, 128>}, {pipeline_mode = #tpu.pipeline_mode<synchronous>, transform_indices = @transform_2, window_bounds = array<i64: 7, 128, 128>}, {pipeline_mode = #tpu.pipeline_mode<synchronous>, transform_indices = @transform_3, window_bounds = array<i64: 8, 128>}, {transform_indices = @transform_4, window_bounds = array<i64: 16, 1>}]} {
    %c0 = arith.constant 0 : index
    %c0_0 = arith.constant 0 : index
    %0 = vector.load %arg1[%c0, %c0_0] : memref<16x256xbf16, #tpu.memory_space<vmem>>, vector<16x256xbf16>
    %c0_1 = arith.constant 0 : index
    %c0_2 = arith.constant 0 : index
    %1 = vector.load %arg2[%c0_1, %c0_2] : memref<256x128xbf16, #tpu.memory_space<vmem>>, vector<256x128xbf16>
    %cst = arith.constant dense<0.000000e+00> : vector<16x128xf32>
    %2 = tpu.matmul %0, %1, %cst {dimension_numbers = #tpu.dot_dimension_numbers<[1], [0], [0], [1], [0, 0, 1, 1], [], []>} : vector<16x256xbf16>, vector<256x128xbf16>, vector<16x128xf32> -> vector<16x128xf32>
    %c0_3 = arith.constant 0 : index
    %c0_4 = arith.constant 0 : index
    %3 = vector.load %arg4[%c0_3, %c0_4] : memref<8x128xf32, #tpu.memory_space<vmem>>, vector<1x128xf32>
    %4 = vector.broadcast %3 : vector<1x128xf32> to vector<16x128xf32>
    %5 = arith.addf %2, %4 : vector<16x128xf32>
    %cst_5 = arith.constant 0.000000e+00 : f32
    %6 = vector.broadcast %cst_5 : f32 to vector<16x128xf32>
    %7 = arith.cmpf ogt, %5, %6 : vector<16x128xf32>
    %cst_6 = arith.constant 2.000000e-01 : f32
    %8 = vector.broadcast %cst_6 : f32 to vector<16x128xf32>
    %9 = arith.mulf %8, %5 : vector<16x128xf32>
    %10 = arith.select %7, %5, %9 : vector<16x128xi1>, vector<16x128xf32>
    %11 = arith.truncf %10 : vector<16x128xf32> to vector<16x128xbf16>
    %c0_7 = arith.constant 0 : index
    %c0_8 = arith.constant 0 : index
    %c0_9 = arith.constant 0 : index
    %12 = vector.load %arg3[%c0_7, %c0_8, %c0_9] : memref<7x128x128xbf16, #tpu.memory_space<vmem>>, vector<1x128x128xbf16>
    %13 = vector.shape_cast %12 : vector<1x128x128xbf16> to vector<128x128xbf16>
    %cst_10 = arith.constant dense<0.000000e+00> : vector<16x128xf32>
    %14 = tpu.matmul %11, %13, %cst_10 {dimension_numbers = #tpu.dot_dimension_numbers<[1], [0], [0], [1], [0, 0, 1, 1], [], []>} : vector<16x128xbf16>, vector<128x128xbf16>, vector<16x128xf32> -> vector<16x128xf32>
    %c1 = arith.constant 1 : index
    %c0_11 = arith.constant 0 : index
    %15 = vector.load %arg4[%c1, %c0_11] : memref<8x128xf32, #tpu.memory_space<vmem>>, vector<1x128xf32>
    %16 = vector.broadcast %15 : vector<1x128xf32> to vector<16x128xf32>
    %17 = arith.addf %14, %16 : vector<16x128xf32>
    %cst_12 = arith.constant 0.000000e+00 : f32
    %18 = vector.broadcast %cst_12 : f32 to vector<16x128xf32>
    %19 = arith.cmpf ogt, %17, %18 : vector<16x128xf32>
    %cst_13 = arith.constant 2.000000e-01 : f32
    %20 = vector.broadcast %cst_13 : f32 to vector<16x128xf32>
    %21 = arith.mulf %20, %17 : vector<16x128xf32>
    %22 = arith.select %19, %17, %21 : vector<16x128xi1>, vector<16x128xf32>
    %23 = arith.truncf %22 : vector<16x128xf32> to vector<16x128xbf16>
    %c1_14 = arith.constant 1 : index
    %c0_15 = arith.constant 0 : index
    %c0_16 = arith.constant 0 : index
    %24 = vector.load %arg3[%c1_14, %c0_15, %c0_16] : memref<7x128x128xbf16, #tpu.memory_space<vmem>>, vector<1x128x128xbf16>
    %25 = vector.shape_cast %24 : vector<1x128x128xbf16> to vector<128x128xbf16>
    %cst_17 = arith.constant dense<0.000000e+00> : vector<16x128xf32>
    %26 = tpu.matmul %23, %25, %cst_17 {dimension_numbers = #tpu.dot_dimension_numbers<[1], [0], [0], [1], [0, 0, 1, 1], [], []>} : vector<16x128xbf16>, vector<128x128xbf16>, vector<16x128xf32> -> vector<16x128xf32>
    %c2 = arith.constant 2 : index
    %c0_18 = arith.constant 0 : index
    %27 = vector.load %arg4[%c2, %c0_18] : memref<8x128xf32, #tpu.memory_space<vmem>>, vector<1x128xf32>
    %28 = vector.broadcast %27 : vector<1x128xf32> to vector<16x128xf32>
    %29 = arith.addf %26, %28 : vector<16x128xf32>
    %cst_19 = arith.constant 0.000000e+00 : f32
    %30 = vector.broadcast %cst_19 : f32 to vector<16x128xf32>
    %31 = arith.cmpf ogt, %29, %30 : vector<16x128xf32>
    %cst_20 = arith.constant 2.000000e-01 : f32
    %32 = vector.broadcast %cst_20 : f32 to vector<16x128xf32>
    %33 = arith.mulf %32, %29 : vector<16x128xf32>
    %34 = arith.select %31, %29, %33 : vector<16x128xi1>, vector<16x128xf32>
    %35 = arith.truncf %34 : vector<16x128xf32> to vector<16x128xbf16>
    %c2_21 = arith.constant 2 : index
    %c0_22 = arith.constant 0 : index
    %c0_23 = arith.constant 0 : index
    %36 = vector.load %arg3[%c2_21, %c0_22, %c0_23] : memref<7x128x128xbf16, #tpu.memory_space<vmem>>, vector<1x128x128xbf16>
    %37 = vector.shape_cast %36 : vector<1x128x128xbf16> to vector<128x128xbf16>
    %cst_24 = arith.constant dense<0.000000e+00> : vector<16x128xf32>
    %38 = tpu.matmul %35, %37, %cst_24 {dimension_numbers = #tpu.dot_dimension_numbers<[1], [0], [0], [1], [0, 0, 1, 1], [], []>} : vector<16x128xbf16>, vector<128x128xbf16>, vector<16x128xf32> -> vector<16x128xf32>
    %c3 = arith.constant 3 : index
    %c0_25 = arith.constant 0 : index
    %39 = vector.load %arg4[%c3, %c0_25] : memref<8x128xf32, #tpu.memory_space<vmem>>, vector<1x128xf32>
    %40 = vector.broadcast %39 : vector<1x128xf32> to vector<16x128xf32>
    %41 = arith.addf %38, %40 : vector<16x128xf32>
    %cst_26 = arith.constant 0.000000e+00 : f32
    %42 = vector.broadcast %cst_26 : f32 to vector<16x128xf32>
    %43 = arith.cmpf ogt, %41, %42 : vector<16x128xf32>
    %cst_27 = arith.constant 2.000000e-01 : f32
    %44 = vector.broadcast %cst_27 : f32 to vector<16x128xf32>
    %45 = arith.mulf %44, %41 : vector<16x128xf32>
    %46 = arith.select %43, %41, %45 : vector<16x128xi1>, vector<16x128xf32>
    %47 = arith.truncf %46 : vector<16x128xf32> to vector<16x128xbf16>
    %c3_28 = arith.constant 3 : index
    %c0_29 = arith.constant 0 : index
    %c0_30 = arith.constant 0 : index
    %48 = vector.load %arg3[%c3_28, %c0_29, %c0_30] : memref<7x128x128xbf16, #tpu.memory_space<vmem>>, vector<1x128x128xbf16>
    %49 = vector.shape_cast %48 : vector<1x128x128xbf16> to vector<128x128xbf16>
    %cst_31 = arith.constant dense<0.000000e+00> : vector<16x128xf32>
    %50 = tpu.matmul %47, %49, %cst_31 {dimension_numbers = #tpu.dot_dimension_numbers<[1], [0], [0], [1], [0, 0, 1, 1], [], []>} : vector<16x128xbf16>, vector<128x128xbf16>, vector<16x128xf32> -> vector<16x128xf32>
    %c4 = arith.constant 4 : index
    %c0_32 = arith.constant 0 : index
    %51 = vector.load %arg4[%c4, %c0_32] : memref<8x128xf32, #tpu.memory_space<vmem>>, vector<1x128xf32>
    %52 = vector.broadcast %51 : vector<1x128xf32> to vector<16x128xf32>
    %53 = arith.addf %50, %52 : vector<16x128xf32>
    %cst_33 = arith.constant 0.000000e+00 : f32
    %54 = vector.broadcast %cst_33 : f32 to vector<16x128xf32>
    %55 = arith.cmpf ogt, %53, %54 : vector<16x128xf32>
    %cst_34 = arith.constant 2.000000e-01 : f32
    %56 = vector.broadcast %cst_34 : f32 to vector<16x128xf32>
    %57 = arith.mulf %56, %53 : vector<16x128xf32>
    %58 = arith.select %55, %53, %57 : vector<16x128xi1>, vector<16x128xf32>
    %59 = arith.truncf %58 : vector<16x128xf32> to vector<16x128xbf16>
    %c4_35 = arith.constant 4 : index
    %c0_36 = arith.constant 0 : index
    %c0_37 = arith.constant 0 : index
    %60 = vector.load %arg3[%c4_35, %c0_36, %c0_37] : memref<7x128x128xbf16, #tpu.memory_space<vmem>>, vector<1x128x128xbf16>
    %61 = vector.shape_cast %60 : vector<1x128x128xbf16> to vector<128x128xbf16>
    %cst_38 = arith.constant dense<0.000000e+00> : vector<16x128xf32>
    %62 = tpu.matmul %59, %61, %cst_38 {dimension_numbers = #tpu.dot_dimension_numbers<[1], [0], [0], [1], [0, 0, 1, 1], [], []>} : vector<16x128xbf16>, vector<128x128xbf16>, vector<16x128xf32> -> vector<16x128xf32>
    %c5 = arith.constant 5 : index
    %c0_39 = arith.constant 0 : index
    %63 = vector.load %arg4[%c5, %c0_39] : memref<8x128xf32, #tpu.memory_space<vmem>>, vector<1x128xf32>
    %64 = vector.broadcast %63 : vector<1x128xf32> to vector<16x128xf32>
    %65 = arith.addf %62, %64 : vector<16x128xf32>
    %cst_40 = arith.constant 0.000000e+00 : f32
    %66 = vector.broadcast %cst_40 : f32 to vector<16x128xf32>
    %67 = arith.cmpf ogt, %65, %66 : vector<16x128xf32>
    %cst_41 = arith.constant 2.000000e-01 : f32
    %68 = vector.broadcast %cst_41 : f32 to vector<16x128xf32>
    %69 = arith.mulf %68, %65 : vector<16x128xf32>
    %70 = arith.select %67, %65, %69 : vector<16x128xi1>, vector<16x128xf32>
    %71 = arith.truncf %70 : vector<16x128xf32> to vector<16x128xbf16>
    %c5_42 = arith.constant 5 : index
    %c0_43 = arith.constant 0 : index
    %c0_44 = arith.constant 0 : index
    %72 = vector.load %arg3[%c5_42, %c0_43, %c0_44] : memref<7x128x128xbf16, #tpu.memory_space<vmem>>, vector<1x128x128xbf16>
    %73 = vector.shape_cast %72 : vector<1x128x128xbf16> to vector<128x128xbf16>
    %cst_45 = arith.constant dense<0.000000e+00> : vector<16x128xf32>
    %74 = tpu.matmul %71, %73, %cst_45 {dimension_numbers = #tpu.dot_dimension_numbers<[1], [0], [0], [1], [0, 0, 1, 1], [], []>} : vector<16x128xbf16>, vector<128x128xbf16>, vector<16x128xf32> -> vector<16x128xf32>
    %c6 = arith.constant 6 : index
    %c0_46 = arith.constant 0 : index
    %75 = vector.load %arg4[%c6, %c0_46] : memref<8x128xf32, #tpu.memory_space<vmem>>, vector<1x128xf32>
    %76 = vector.broadcast %75 : vector<1x128xf32> to vector<16x128xf32>
    %77 = arith.addf %74, %76 : vector<16x128xf32>
    %cst_47 = arith.constant 0.000000e+00 : f32
    %78 = vector.broadcast %cst_47 : f32 to vector<16x128xf32>
    %79 = arith.cmpf ogt, %77, %78 : vector<16x128xf32>
    %cst_48 = arith.constant 2.000000e-01 : f32
    %80 = vector.broadcast %cst_48 : f32 to vector<16x128xf32>
    %81 = arith.mulf %80, %77 : vector<16x128xf32>
    %82 = arith.select %79, %77, %81 : vector<16x128xi1>, vector<16x128xf32>
    %83 = arith.truncf %82 : vector<16x128xf32> to vector<16x128xbf16>
    %c6_49 = arith.constant 6 : index
    %c0_50 = arith.constant 0 : index
    %c0_51 = arith.constant 0 : index
    %84 = vector.load %arg3[%c6_49, %c0_50, %c0_51] : memref<7x128x128xbf16, #tpu.memory_space<vmem>>, vector<1x128x128xbf16>
    %85 = vector.shape_cast %84 : vector<1x128x128xbf16> to vector<128x128xbf16>
    %cst_52 = arith.constant dense<0.000000e+00> : vector<16x128xf32>
    %86 = tpu.matmul %83, %85, %cst_52 {dimension_numbers = #tpu.dot_dimension_numbers<[1], [0], [0], [1], [0, 0, 1, 1], [], []>} : vector<16x128xbf16>, vector<128x128xbf16>, vector<16x128xf32> -> vector<16x128xf32>
    %c7 = arith.constant 7 : index
    %c0_53 = arith.constant 0 : index
    %87 = vector.load %arg4[%c7, %c0_53] : memref<8x128xf32, #tpu.memory_space<vmem>>, vector<1x128xf32>
    %88 = vector.broadcast %87 : vector<1x128xf32> to vector<16x128xf32>
    %89 = arith.addf %86, %88 : vector<16x128xf32>
    %90 = math.absf %89 : vector<16x128xf32>
    %cst_54 = arith.constant 0.000000e+00 : f32
    %91 = vector.broadcast %cst_54 : f32 to vector<16x128xf32>
    %92 = arith.subf %91, %90 : vector<16x128xf32>
    %93 = math.exp %92 : vector<16x128xf32>
    %cst_55 = arith.constant 1.000000e+00 : f32
    %94 = vector.broadcast %cst_55 : f32 to vector<16x128xf32>
    %95 = arith.addf %94, %93 : vector<16x128xf32>
    %96 = tpu.reciprocal %95 {approx = true} : vector<16x128xf32> -> vector<16x128xf32>
    %cst_56 = arith.constant 0.000000e+00 : f32
    %97 = vector.broadcast %cst_56 : f32 to vector<16x128xf32>
    %98 = arith.cmpf oge, %89, %97 : vector<16x128xf32>
    %99 = arith.mulf %93, %96 : vector<16x128xf32>
    %100 = arith.select %98, %96, %99 : vector<16x128xi1>, vector<16x128xf32>
    %101 = vector.extract_strided_slice %100 {offsets = [0, 0], sizes = [16, 1], strides = [1, 1]} : vector<16x128xf32> to vector<16x1xf32>
    %c0_57 = arith.constant 0 : index
    %c0_58 = arith.constant 0 : index
    %102 = vector.load %arg5[%c0_57, %c0_58] : memref<16x1xf32, #tpu.memory_space<vmem>>, vector<16x1xf32>
    tpu.vector_store %arg5[%c0_57, %c0_58], %101 {strides = array<i32>} : memref<16x1xf32, #tpu.memory_space<vmem>>, vector<16x1xf32>,
    return
  }
  func.func @transform_0(%arg0: i32) -> (i32, i32) {
    %c0_i32 = arith.constant 0 : i32
    %c0_i32_0 = arith.constant 0 : i32
    return %arg0, %c0_i32 : i32, i32
  }
  func.func @transform_1(%arg0: i32) -> (i32, i32) {
    %c0_i32 = arith.constant 0 : i32
    %c0_i32_0 = arith.constant 0 : i32
    %c0_i32_1 = arith.constant 0 : i32
    return %c0_i32, %c0_i32_0 : i32, i32
  }
  func.func @transform_2(%arg0: i32) -> (i32, i32, i32) {
    %c0_i32 = arith.constant 0 : i32
    %c0_i32_0 = arith.constant 0 : i32
    %c0_i32_1 = arith.constant 0 : i32
    %c0_i32_2 = arith.constant 0 : i32
    return %c0_i32, %c0_i32_0, %c0_i32_1 : i32, i32, i32
  }
  func.func @transform_3(%arg0: i32) -> (i32, i32) {
    %c0_i32 = arith.constant 0 : i32
    %c0_i32_0 = arith.constant 0 : i32
    %c0_i32_1 = arith.constant 0 : i32
    return %c0_i32, %c0_i32_0 : i32, i32
  }
  func.func @transform_4(%arg0: i32) -> (i32, i32) {
    %c0_i32 = arith.constant 0 : i32
    %c0_i32_0 = arith.constant 0 : i32
    return %arg0, %c0_i32 : i32, i32
  }
}

</mosaic_0001>

<bundles_post_ra>
// kernel: discriminator_forward.1
= control target key start
LH: loop header
LB: loop body
LE: loop exit
PB: predicated region body
PF: predicated region fallthrough
CT: control target
= control target key end

     0   :  { %9 = vsyncpa [#allocation3], 0  ;;  %s1380_s0 = inlined_call_operand.vmem [shape: bf16[16,256], index: 0, kind: input, shape index: {}]   ;;  %s1381_s1 = inlined_call_operand.hbm [shape: bf16[256,128], index: 1, kind: input, shape index: {}]   ;;  %s1382_s2 = inlined_call_operand.hbm [shape: bf16[7,128,128], index: 2, kind: input, shape index: {}]   ;;  %s1383_s3 = inlined_call_operand.vmem [shape: f32[8,128], index: 3, kind: input, shape index: {}]   ;;  %s1384_s4 = inlined_call_operand.vmem [shape: f32[16,1], index: 4, kind: output, shape index: {}]  }
   0x1   :  { %s17_s17 = sshll.u32 %s1381_s1, 4  ;;  %s18_s17 = int_to_ptr.hbm [resolvable:$true] %s17_s17 }
   0x2   :  { %10 = vsyncpa [#allocation5], 0  ;;  %s1303_s18 = smov [#allocation2]   ;;  %s30_s22 = sshll.u32 %s1382_s2, 4  ;;  %s31_s22 = int_to_ptr.hbm [resolvable:$true] %s30_s22 }
   0x3   :  { %s19_s19 = sshll.u32 %s1303_s18, 4  ;;  %s1304_s23 = smov 64   ;;  %s20_s19 = int_to_ptr.vmem [resolvable:$true] %s19_s19 }
   0x4   :  { %s1305_s24 = smov 4   ;;  %s1306_s25 = smov [#allocation4]  }
   0x5   :  { %25 = dma.hbm_to_vmem [thread:$0]  %s18_s17, 2048, %s20_s19, [#allocation3], %s1304_s23, %s1304_s23, %s1305_s24  }
   0x6   :  { %s32_s26 = sshll.u32 %s1306_s25, 4  ;;  %s33_s26 = int_to_ptr.vmem [resolvable:$true] %s32_s26 }
   0x7   :  { %38 = dma.hbm_to_vmem [thread:$0]  %s31_s22, 7168, %s33_s26, [#allocation5], %s1304_s23, %s1304_s23, %s1305_s24  }
   0x8   :  { %1299 = dma.done.wait [#allocation3], 2048  }
   0x9   :  { %1300 = vsyncadd [#allocation3], 4294965248 }
   0xa   :  { %1301 = dma.done.wait [#allocation5], 7168  }
   0xb   :  { %1302 = vsyncadd [#allocation5], 4294960128  ;;  %v1166_v0 = vld [vmem:[#allocation2 + $0x38] sm:$0xff]  ;;  %v1165_v2 = vld [vmem:[#allocation2 + $0x30] sm:$0xff]  ;;  %vm852_vm14 = vcmask 7168  }
   0xc   :  { %v1174_v1 = vld [vmem:[#allocation2 + $0x78] sm:$0xff]  ;;  %191 = vmatpush.bf16.msra.mxu0 %v1166_v0  ;;  %v1173_v3 = vld [vmem:[#allocation2 + $0x70] sm:$0xff]  ;;  %v1164_v4 = vld [vmem:[#allocation2 + $0x28] sm:$0xff] }
   0xd   :  { %205 = vmatpush.bf16.msra.mxu1 %v1174_v1  ;;  %v1172_v5 = vld [vmem:[#allocation2 + $0x68] sm:$0xff]  ;;  %v1182_v6 = vld [vmem:[#allocation4 + $0x38] sm:$0xff]  ;;  %v1163_v7 = vld [vmem:[#allocation2 + $0x20] sm:$0xff] }
   0xe   :  { %v1171_v8 = vld [vmem:[#allocation2 + $0x60] sm:$0xff]  ;;  %292 = vmatpush.bf16.msra.mxu2 %v1182_v6  ;;  %v1181_v9 = vld [vmem:[#allocation4 + $0x30] sm:$0xff]  ;;  %v1180_v10 = vld [vmem:[#allocation4 + $0x28] sm:$0xff] }
   0xf   :  { %v1162_v11 = vld [vmem:[#allocation2 + $0x18] sm:$0xff]  ;;  %v1179_v13 = vld [vmem:[#allocation4 + $0x20] sm:$0xff]  ;;  %v1161_v14 = vld [vmem:[#allocation2 + $0x10] sm:$0xff] }
  0x10   :  { %192 = vmatpush.bf16.msra.mxu0 %v1165_v2  ;;  %v1170_v12 = vld [vmem:[#allocation2 + $0x58] sm:$0xff]  ;;  %v1169_v15 = vld [vmem:[#allocation2 + $0x50] sm:$0xff]  ;;  %v1160_v16 = vld [vmem:[#allocation2 + $0x8] sm:$0xff] }
  0x11   :  { %206 = vmatpush.bf16.msra.mxu1 %v1173_v3  ;;  %v1168_v17 = vld [vmem:[#allocation2 + $0x48] sm:$0xff]  ;;  %v1159_v18 = vld [vmem:[#allocation2] sm:$0xff]  ;;  %v1178_v26 = vld [vmem:[#allocation4 + $0x18] sm:$0xff] }
  0x12   :  { %293 = vmatpush.bf16.msra.mxu2 %v1181_v9  ;;  %v1167_v19 = vld [vmem:[#allocation2 + $0x40] sm:$0xff]  ;;  %v1158_v21 = vld [vmem:[%s1380_s0 + $0x4] sm:$0xf0]  ;;  %v865_v23 = vld [vmem:[%s1380_s0 + $0x8] sm:$0xf0] }
  0x13   :  { %v863_v20 = vld [vmem:[%s1380_s0] sm:$0xf]  ;;  %v1157_v22 = vld [vmem:[%s1380_s0 + $0x4] sm:$0xf]  ;;  %v1177_v27 = vld [vmem:[#allocation4 + $0x10] sm:$0xff] }
  0x14   :  { %193 = vmatpush.bf16.msra.mxu0 %v1164_v4  ;;  %v864_v24 = vor.u32 %v1158_v21, %v863_v20  ;;  %v868_v25 = vor.u32 %v1157_v22, %v865_v23  ;;  %v1176_v28 = vld [vmem:[#allocation4 + $0x8] sm:$0xff]  ;;  %v1175_v29 = vld [vmem:[#allocation4] sm:$0xff]  ;;  %v1190_v30 = vld [vmem:[#allocation4 + $0x78] sm:$0xff] }
  0x15   :  { %207 = vmatpush.bf16.msra.mxu1 %v1172_v5  ;;  %380 = vmatpush.bf16.msra.mxu3 %v1190_v30  ;;  %v1189_v31 = vld [vmem:[#allocation4 + $0x70] sm:$0xff]  ;;  %v1188_v32 = vld [vmem:[#allocation4 + $0x68] sm:$0xff]  ;;  %v1187_v33 = vld [vmem:[#allocation4 + $0x60] sm:$0xff] }
  0x16   :  { %294 = vmatpush.bf16.msra.mxu2 %v1180_v10  ;;  %v1235_v34 = vld [vmem:[%s1383_s3] ss:$0 sm:$0xff]  ;;  %v1186_v48 = vld [vmem:[#allocation4 + $0x58] sm:$0xff]  ;;  %v1185_v49 = vld [vmem:[#allocation4 + $0x50] sm:$0xff] }
  0x17   :  { %v1184_v50 = vld [vmem:[#allocation4 + $0x48] sm:$0xff]  ;;  %v1183_v51 = vld [vmem:[#allocation4 + $0x40] sm:$0xff]  ;;  %v1198_v52 = vld [vmem:[#allocation4 + $0xb8] sm:$0xff] }
  0x18   :  { %194 = vmatpush.bf16.msra.mxu0 %v1163_v7  ;;  %v1197_v53 = vld [vmem:[#allocation4 + $0xb0] sm:$0xff]  ;;  %v1196_v54 = vld [vmem:[#allocation4 + $0xa8] sm:$0xff]  ;;  %v1195_v55 = vld [vmem:[#allocation4 + $0xa0] sm:$0xff] }
  0x19   :  { %208 = vmatpush.bf16.msra.mxu1 %v1171_v8  ;;  %381 = vmatpush.bf16.msra.mxu3 %v1189_v31  ;;  %v1236_v57 = vld [vmem:[%s1383_s3 + $0x1] ss:$0 sm:$0xff]  ;;  %v1194_v2 = vld [vmem:[#allocation4 + $0x98] sm:$0xff]  ;;  %v1193_v3 = vld [vmem:[#allocation4 + $0x90] sm:$0xff] }
  0x1a   :  { %295 = vmatpush.bf16.msra.mxu2 %v1179_v13  ;;  %v1192_v4 = vld [vmem:[#allocation4 + $0x88] sm:$0xff]  ;;  %v1191_v5 = vld [vmem:[#allocation4 + $0x80] sm:$0xff]  ;;  %v1206_v6 = vld [vmem:[#allocation4 + $0xf8] sm:$0xff] }
  0x1b   :  { %v1205_v7 = vld [vmem:[#allocation4 + $0xf0] sm:$0xff]  ;;  %v1204_v8 = vld [vmem:[#allocation4 + $0xe8] sm:$0xff]  ;;  %v1203_v9 = vld [vmem:[#allocation4 + $0xe0] sm:$0xff] }
  0x1c   :  { %195 = vmatpush.bf16.msra.mxu0 %v1162_v11  ;;  %v1237_v11 = vld [vmem:[%s1383_s3 + $0x2] ss:$0 sm:$0xff]  ;;  %v1202_v20 = vld [vmem:[#allocation4 + $0xd8] sm:$0xff]  ;;  %v1201_v21 = vld [vmem:[#allocation4 + $0xd0] sm:$0xff] }
  0x1d   :  { %209 = vmatpush.bf16.msra.mxu1 %v1170_v12  ;;  %382 = vmatpush.bf16.msra.mxu3 %v1188_v32  ;;  %v1200_v22 = vld [vmem:[#allocation4 + $0xc8] sm:$0xff]  ;;  %v1199_v23 = vld [vmem:[#allocation4 + $0xc0] sm:$0xff] }
  0x1e   :  { %296 = vmatpush.bf16.msra.mxu2 %v1178_v26  ;;  %v1212_v26 = vld [vmem:[#allocation4 + $0x128] sm:$0xff] }
  0x20   :  { %196 = vmatpush.bf16.msra.mxu0 %v1161_v14 }
  0x21   :  { %210 = vmatpush.bf16.msra.mxu1 %v1169_v15  ;;  %383 = vmatpush.bf16.msra.mxu3 %v1187_v33 }
  0x22   :  { %297 = vmatpush.bf16.msra.mxu2 %v1177_v27  ;;  %v1211_v27 = vld [vmem:[#allocation4 + $0x120] sm:$0xff] }
  0x24   :  { %197 = vmatpush.bf16.msra.mxu0 %v1160_v16 }
  0x25   :  { %211 = vmatpush.bf16.msra.mxu1 %v1168_v17  ;;  %384 = vmatpush.bf16.msra.mxu3 %v1186_v48 }
  0x26   :  { %298 = vmatpush.bf16.msra.mxu2 %v1176_v28 }
  0x28   :  { %198 = vmatpush.bf16.msra.mxu0 %v1159_v18 }
  0x29   :  { %212 = vmatpush.bf16.msra.mxu1 %v1167_v19  ;;  %385 = vmatpush.bf16.msra.mxu3 %v1185_v49 }
  0x2a   :  { %299 = vmatpush.bf16.msra.mxu2 %v1175_v29  ;;  %v1238_v29 = vld [vmem:[%s1383_s3 + $0x3] ss:$0 sm:$0xff] }
  0x2b   :  { %199 = vmatmul.bf16.vlgmr.msra.gmra.mxu0 %v864_v24  ;;  %v1214_v24 = vld [vmem:[#allocation4 + $0x138] sm:$0xff] }
  0x2c   :  { %213 = vmatmul.bf16.vlgmr.msra.gmra.mxu1 %v868_v25  ;;  %468 = vmatpush.bf16.msrb.mxu0 %v1198_v52  ;;  %v1213_v25 = vld [vmem:[#allocation4 + $0x130] sm:$0xff] }
  0x2d   :  { %386 = vmatpush.bf16.msra.mxu3 %v1184_v50  ;;  %556 = vmatpush.bf16.msrb.mxu1 %v1206_v6 }
  0x2e   :  { %644 = vmatpush.bf16.msrb.mxu2 %v1214_v24  ;;  %v1242_v24 = vld [vmem:[%s1383_s3 + $0x7] ss:$0 sm:$0xff] }
  0x30   :  { %469 = vmatpush.bf16.msrb.mxu0 %v1197_v53 }
  0x31   :  { %387 = vmatpush.bf16.msra.mxu3 %v1183_v51  ;;  %557 = vmatpush.bf16.msrb.mxu1 %v1205_v7 }
  0x32   :  { %645 = vmatpush.bf16.msrb.mxu2 %v1213_v25 }
  0x34   :  { %470 = vmatpush.bf16.msrb.mxu0 %v1196_v54 }
  0x35   :  { %558 = vmatpush.bf16.msrb.mxu1 %v1204_v8 }
  0x36   :  { %646 = vmatpush.bf16.msrb.mxu2 %v1212_v26 }
  0x38   :  { %471 = vmatpush.bf16.msrb.mxu0 %v1195_v55 }
  0x39   :  { %559 = vmatpush.bf16.msrb.mxu1 %v1203_v9 }
  0x3a   :  { %647 = vmatpush.bf16.msrb.mxu2 %v1211_v27 }
  0x3c   :  { %472 = vmatpush.bf16.msrb.mxu0 %v1194_v2 }
  0x3d   :  { %560 = vmatpush.bf16.msrb.mxu1 %v1202_v20 }
  0x40   :  { %473 = vmatpush.bf16.msrb.mxu0 %v1193_v3 }
  0x41   :  { %561 = vmatpush.bf16.msrb.mxu1 %v1201_v21 }
  0x44   :  { %474 = vmatpush.bf16.msrb.mxu0 %v1192_v4 }
  0x45   :  { %562 = vmatpush.bf16.msrb.mxu1 %v1200_v22 }
  0x48   :  { %475 = vmatpush.bf16.msrb.mxu0 %v1191_v5 }
  0x49   :  { %563 = vmatpush.bf16.msrb.mxu1 %v1199_v23 }
  0xa8   :  { %v200_v35 = vpop.f32.mrf.mxu0 }
  0xa9   :  { %v214_v36 = vpop.f32.mrf.mxu1  ;;  %v201_v37 = vadd.f32 %v1235_v34, %v200_v35 }
  0xab   :  { %v215_v38 = vadd.f32 %v214_v36, %v201_v37 }
  0xad   :  { %v221_v42 = vmul.f32 0.2, %v215_v38  ;;  %vm219_vm0 = vcmp.gt.f32.partialorder %v215_v38, 0.0 }
  0xaf   :  { %v223_v45 = vsel %vm219_vm0, %v215_v38, %v221_v42  ;;  %v1210_v38 = vld [vmem:[#allocation4 + $0x118] sm:$0xff] }
  0xb0   :  { %v202_v39 = vpop.f32.mrf.mxu0  ;;  %648 = vmatpush.bf16.msrb.mxu2 %v1210_v38  ;;  %v1222_v42 = vld [vmem:[#allocation4 + $0x178] sm:$0xff] }
  0xb1   :  { %v203_v40 = vadd.f32 %v1235_v34, %v202_v39  ;;  %v216_v41 = vpop.f32.mrf.mxu1  ;;  %v1209_v39 = vld [vmem:[#allocation4 + $0x110] sm:$0xff]  ;;  %732 = vmatpush.bf16.msrb.mxu3 %v1222_v42 }
  0xb3   :  { %v217_v43 = vadd.f32 %v216_v41, %v203_v40  ;;  %v1208_v40 = vld [vmem:[#allocation4 + $0x108] sm:$0xff]  ;;  %v1207_v41 = vld [vmem:[#allocation4 + $0x100] sm:$0xff] }
  0xb4   :  { %649 = vmatpush.bf16.msrb.mxu2 %v1209_v39 }
  0xb5   :  { %v222_v44 = vmul.f32 0.2, %v217_v43  ;;  %vm220_vm1 = vcmp.gt.f32.partialorder %v217_v43, 0.0 }
  0xb7   :  { %v224_v46 = vsel %vm220_vm1, %v217_v43, %v222_v44  ;;  %v1221_v43 = vld [vmem:[#allocation4 + $0x170] sm:$0xff]  ;;  %v1220_v44 = vld [vmem:[#allocation4 + $0x168] sm:$0xff] }
  0xb8   :  { %v225_v47 = vpack.c.bf16 %v224_v46, %v223_v45  ;;  %650 = vmatpush.bf16.msrb.mxu2 %v1208_v40  ;;  %733 = vmatpush.bf16.msrb.mxu3 %v1221_v43  ;;  %v1219_v45 = vld [vmem:[#allocation4 + $0x160] sm:$0xff] }
  0xba   :  { %300 = vmatmul.bf16.vlgmr.msra.gmra.mxu2 %v225_v47  ;;  %v1239_v47 = vld [vmem:[%s1383_s3 + $0x4] ss:$0 sm:$0xff] }
  0xbc   :  { %651 = vmatpush.bf16.msrb.mxu2 %v1207_v41  ;;  %734 = vmatpush.bf16.msrb.mxu3 %v1220_v44 }
  0xc0   :  { %735 = vmatpush.bf16.msrb.mxu3 %v1219_v45 }
 0x13d   :  { %v301_v56 = vpop.f32.mrf.mxu2 }
 0x13e   :  { %v302_v58 = vadd.f32 %v1236_v57, %v301_v56  ;;  %v1218_v56 = vld [vmem:[#allocation4 + $0x158] sm:$0xff] }
 0x13f   :  { %736 = vmatpush.bf16.msrb.mxu3 %v1218_v56 }
 0x140   :  { %v308_v60 = vmul.f32 0.2, %v302_v58  ;;  %vm306_vm2 = vcmp.gt.f32.partialorder %v302_v58, 0.0 }
 0x142   :  { %v310_v63 = vsel %vm306_vm2, %v302_v58, %v308_v60  ;;  %v1216_v58 = vld [vmem:[#allocation4 + $0x148] sm:$0xff]  ;;  %v1230_v60 = vld [vmem:[#allocation4 + $0x1b8] sm:$0xff] }
 0x143   :  { %820 = vmatpush.bf16.msra.mxu0 %v1230_v60 }
 0x145   :  { %v303_v59 = vpop.f32.mrf.mxu2 }
 0x146   :  { %v304_v61 = vadd.f32 %v1236_v57, %v303_v59  ;;  %v1217_v57 = vld [vmem:[#allocation4 + $0x150] sm:$0xff]  ;;  %v1215_v59 = vld [vmem:[#allocation4 + $0x140] sm:$0xff] }
 0x147   :  { %737 = vmatpush.bf16.msrb.mxu3 %v1217_v57 }
 0x148   :  { %v309_v62 = vmul.f32 0.2, %v304_v61  ;;  %vm307_vm3 = vcmp.gt.f32.partialorder %v304_v61, 0.0 }
 0x14a   :  { %v311_v0 = vsel %vm307_vm3, %v304_v61, %v309_v62  ;;  %v1229_v61 = vld [vmem:[#allocation4 + $0x1b0] sm:$0xff]  ;;  %v1228_v62 = vld [vmem:[#allocation4 + $0x1a8] sm:$0xff] }
 0x14b   :  { %v312_v1 = vpack.c.bf16 %v311_v0, %v310_v63  ;;  %738 = vmatpush.bf16.msrb.mxu3 %v1216_v58  ;;  %821 = vmatpush.bf16.msra.mxu0 %v1229_v61  ;;  %v1227_v63 = vld [vmem:[#allocation4 + $0x1a0] sm:$0xff] }
 0x14d   :  { %388 = vmatmul.bf16.vlgmr.msra.gmra.mxu3 %v312_v1  ;;  %v1240_v1 = vld [vmem:[%s1383_s3 + $0x5] ss:$0 sm:$0xff] }
 0x14f   :  { %739 = vmatpush.bf16.msrb.mxu3 %v1215_v59  ;;  %822 = vmatpush.bf16.msra.mxu0 %v1228_v62 }
 0x153   :  { %823 = vmatpush.bf16.msra.mxu0 %v1227_v63 }
 0x1d0   :  { %v389_v10 = vpop.f32.mrf.mxu3 }
 0x1d1   :  { %v390_v12 = vadd.f32 %v1237_v11, %v389_v10  ;;  %v1226_v10 = vld [vmem:[#allocation4 + $0x198] sm:$0xff] }
 0x1d2   :  { %824 = vmatpush.bf16.msra.mxu0 %v1226_v10 }
 0x1d3   :  { %v396_v14 = vmul.f32 0.2, %v390_v12  ;;  %vm394_vm4 = vcmp.gt.f32.partialorder %v390_v12, 0.0 }
 0x1d5   :  { %v398_v17 = vsel %vm394_vm4, %v390_v12, %v396_v14  ;;  %v1224_v12 = vld [vmem:[#allocation4 + $0x188] sm:$0xff] }
 0x1d8   :  { %v391_v13 = vpop.f32.mrf.mxu3 }
 0x1d9   :  { %v392_v15 = vadd.f32 %v1237_v11, %v391_v13  ;;  %v1225_v11 = vld [vmem:[#allocation4 + $0x190] sm:$0xff]  ;;  %v1223_v13 = vld [vmem:[#allocation4 + $0x180] sm:$0xff] }
 0x1da   :  { %825 = vmatpush.bf16.msra.mxu0 %v1225_v11 }
 0x1db   :  { %vm395_vm5 = vcmp.gt.f32.partialorder %v392_v15, 0.0  ;;  %v397_v16 = vmul.f32 0.2, %v392_v15 }
 0x1dd   :  { %v399_v18 = vsel %vm395_vm5, %v392_v15, %v397_v16  ;;  %v1241_v15 = vld [vmem:[%s1383_s3 + $0x6] ss:$0 sm:$0xff] }
 0x1de   :  { %v400_v19 = vpack.c.bf16 %v399_v18, %v398_v17  ;;  %826 = vmatpush.bf16.msra.mxu0 %v1224_v12 }
 0x1e0   :  { %476 = vmatmul.bf16.vlgmr.msrb.gmra.mxu0 %v400_v19 }
 0x1e2   :  { %827 = vmatpush.bf16.msra.mxu0 %v1223_v13 }
 0x25d   :  { %v477_v28 = vpop.f32.mrf.mxu0 }
 0x25e   :  { %v478_v30 = vadd.f32 %v1238_v29, %v477_v28 }
 0x260   :  { %v484_v32 = vmul.f32 0.2, %v478_v30  ;;  %vm482_vm6 = vcmp.gt.f32.partialorder %v478_v30, 0.0 }
 0x262   :  { %v486_v35 = vsel %vm482_vm6, %v478_v30, %v484_v32 }
 0x265   :  { %v479_v31 = vpop.f32.mrf.mxu0 }
 0x266   :  { %v480_v33 = vadd.f32 %v1238_v29, %v479_v31 }
 0x268   :  { %vm483_vm7 = vcmp.gt.f32.partialorder %v480_v33, 0.0  ;;  %v485_v34 = vmul.f32 0.2, %v480_v33 }
 0x26a   :  { %v487_v36 = vsel %vm483_vm7, %v480_v33, %v485_v34 }
 0x26b   :  { %v488_v37 = vpack.c.bf16 %v487_v36, %v486_v35 }
 0x26d   :  { %564 = vmatmul.bf16.vlgmr.msrb.gmra.mxu1 %v488_v37 }
 0x2ea   :  { %v565_v46 = vpop.f32.mrf.mxu1 }
 0x2eb   :  { %v566_v48 = vadd.f32 %v1239_v47, %v565_v46 }
 0x2ed   :  { %v572_v50 = vmul.f32 0.2, %v566_v48  ;;  %vm570_vm8 = vcmp.gt.f32.partialorder %v566_v48, 0.0 }
 0x2ef   :  { %v574_v53 = vsel %vm570_vm8, %v566_v48, %v572_v50 }
 0x2f2   :  { %v567_v49 = vpop.f32.mrf.mxu1 }
 0x2f3   :  { %v568_v51 = vadd.f32 %v1239_v47, %v567_v49 }
 0x2f5   :  { %vm571_vm9 = vcmp.gt.f32.partialorder %v568_v51, 0.0  ;;  %v573_v52 = vmul.f32 0.2, %v568_v51 }
 0x2f7   :  { %v575_v54 = vsel %vm571_vm9, %v568_v51, %v573_v52 }
 0x2f8   :  { %v576_v55 = vpack.c.bf16 %v575_v54, %v574_v53 }
 0x2fa   :  { %652 = vmatmul.bf16.vlgmr.msrb.gmra.mxu2 %v576_v55 }
 0x37d   :  { %v653_v0 = vpop.f32.mrf.mxu2 }
 0x37e   :  { %v654_v2 = vadd.f32 %v1240_v1, %v653_v0 }
 0x380   :  { %v660_v4 = vmul.f32 0.2, %v654_v2  ;;  %vm658_vm10 = vcmp.gt.f32.partialorder %v654_v2, 0.0 }
 0x382   :  { %v662_v7 = vsel %vm658_vm10, %v654_v2, %v660_v4 }
 0x385   :  { %v655_v3 = vpop.f32.mrf.mxu2 }
 0x386   :  { %v656_v5 = vadd.f32 %v1240_v1, %v655_v3 }
 0x388   :  { %vm659_vm11 = vcmp.gt.f32.partialorder %v656_v5, 0.0  ;;  %v661_v6 = vmul.f32 0.2, %v656_v5 }
 0x38a   :  { %v663_v8 = vsel %vm659_vm11, %v656_v5, %v661_v6 }
 0x38b   :  { %v664_v9 = vpack.c.bf16 %v663_v8, %v662_v7 }
 0x38d   :  { %740 = vmatmul.bf16.vlgmr.msrb.gmra.mxu3 %v664_v9 }
 0x410   :  { %v741_v14 = vpop.f32.mrf.mxu3 }
 0x411   :  { %v742_v16 = vadd.f32 %v1241_v15, %v741_v14 }
 0x413   :  { %v748_v18 = vmul.f32 0.2, %v742_v16  ;;  %vm746_vm12 = vcmp.gt.f32.partialorder %v742_v16, 0.0 }
 0x415   :  { %v750_v21 = vsel %vm746_vm12, %v742_v16, %v748_v18 }
 0x418   :  { %v743_v17 = vpop.f32.mrf.mxu3 }
 0x419   :  { %v744_v19 = vadd.f32 %v1241_v15, %v743_v17 }
 0x41b   :  { %vm747_vm13 = vcmp.gt.f32.partialorder %v744_v19, 0.0  ;;  %v749_v20 = vmul.f32 0.2, %v744_v19 }
 0x41d   :  { %v751_v22 = vsel %vm747_vm13, %v744_v19, %v749_v20 }
 0x41e   :  { %v752_v23 = vpack.c.bf16 %v751_v22, %v750_v21 }
 0x420   :  { %828 = vmatmul.bf16.vlgmr.msra.gmra.mxu0 %v752_v23 }
 0x49d   :  { %v829_v25 = vpop.f32.mrf.mxu0 }
 0x49e   :  { %v830_v26 = vadd.f32 %v1242_v24, %v829_v25 }
 0x4a0   :  { %v834_v27 = vand.u32 2147483647, %v830_v26  ;;  %vm846_vm15 = vcmp.ge.f32.partialorder %v830_v26, 0.0 }
 0x4a2   :  { %v836_v28 = vsub.f32 0.0, %v834_v27 }
 0x4a4   :  { %v838_v29 = vmul.f32 1.442695, %v836_v28 }
 0x4a5   :  { %v831_v30 = vpop.f32.mrf.mxu0 }
 0x4a6   :  { %1243 = vpow2.f32 %v838_v29  ;;  %v832_v31 = vadd.f32 %v1242_v24, %v831_v30 }
 0x4a8   :  { %v835_v32 = vand.u32 2147483647, %v832_v31  ;;  %vm847_vm0 = vcmp.ge.f32.partialorder %v832_v31, 0.0 }
 0x4aa   :  { %v837_v33 = vsub.f32 0.0, %v835_v32 }
 0x4ac   :  { %v1244_v34 = vpop.eup %1243  ;;  %v840_v35 = vmul.f32 1.442695, %v837_v33 }
 0x4ad   :  { %v842_v36 = vadd.f32 1.0, %v1244_v34 }
 0x4ae   :  { %1245 = vpow2.f32 %v840_v35 }
 0x4af   :  { %1247 = vrcp.f32 %v842_v36 }
 0x4b4   :  { %v1246_v37 = vpop.eup %1245 }
 0x4b5   :  { %v1248_v38 = vpop.eup %1247  ;;  %v843_v39 = vadd.f32 1.0, %v1246_v37 }
 0x4b6   :  { %v848_v40 = vmul.f32 %v1248_v38, %v1244_v34 }
 0x4b7   :  { %1249 = vrcp.f32 %v843_v39 }
 0x4b8   :  { %v850_v41 = vsel %vm846_vm15, %v1248_v38, %v848_v40 }
 0x4b9   :  { %853 = vst.msk [vmem:[%s1384_s4] sm:$0xff] %vm852_vm14, %v850_v41 }
 0x4bd   :  { %v1250_v42 = vpop.eup %1249 }
 0x4be   :  { %v849_v43 = vmul.f32 %v1250_v42, %v1246_v37 }
 0x4c0   :  { %v851_v44 = vsel %vm847_vm0, %v1250_v42, %v849_v43 }
 0x4c1   :  { %854 = vst.msk [vmem:[%s1384_s4 + $0x8] sm:$0xff] %vm852_vm14, %v851_v44 }
 0x4c2   :  { %859 = vsyncpa [#allocation3], 1 }
 0x4c3   :  { %860 = vsyncpa [#allocation5], 1 }

</bundles_post_ra>
